<compile_context>
chip_gen: v7x
topology: tpu7x:2x2x1
jax: 0.10.0
libtpu: 0.0.40
codegen_flags: <defaults>
</compile_context>

<pallas_src>
import jax
import jax.numpy as jnp
from jax.experimental import pallas as pl
from jax.experimental.pallas import tpu as pltpu

_LANE = 128


def _sublane_multiple(dtype) -> int:
    # packed-tile sublane requirement: f32 -> 8, bf16 -> 16, int8/fp8 -> 32
    itemsize = jnp.dtype(dtype).itemsize
    return {4: 8, 2: 16, 1: 32}.get(itemsize, 8)


def swish_kernel(x_ref, o_ref):
    xf = x_ref[...].astype(jnp.float32)        # f32 math (v5e VPU/EUP lack bf16)
    # sigmoid(x) = 0.5 * (tanh(x/2) + 1): one EUP transcendental, no divide /
    # Newton fix-up on the VPU.  Exact to f32 ulp vs 1/(1+exp(-x)).
    sig = 0.5 * (jnp.tanh(0.5 * xf) + 1.0)
    o_ref[...] = (xf * sig).astype(o_ref.dtype)


def _chip_tuning():
    """Return (target_tile_bytes, num_tensorcores) for the local TPU gen."""
    try:
        kind = jax.devices()[0].device_kind.lower()
    except Exception:
        kind = ""
    if "v7" in kind:
        # ~3.2 TB/s HBM: 8 MiB tiles keep the ~0.35us/step overhead <7%;
        # 2 x (in+out) x 8 MiB = 32 MiB of buffers fits the 64 MiB/TC VMEM.
        return 8 << 20, 2
    if "v6" in kind:
        return 4 << 20, 1
    # v5e and unknown: 3 MiB tiles -> 12 MiB of pipeline buffers, comfortably
    # under the limit we request explicitly below (v5e default scoped is only
    # 16 MiB, so we never rely on it).
    return 3 << 20, 1


def _swish_2d(x2d):
    """Run the kernel over a (rows, width) slab, width a multiple of 128."""
    rows, width = x2d.shape
    dtype = x2d.dtype
    itemsize = jnp.dtype(dtype).itemsize
    sub = _sublane_multiple(dtype)
    slab_bytes = rows * width * itemsize

    target_tile_bytes, n_cores = _chip_tuning()

    # Rows per tile targeting the generation's tile budget.
    tm = max(target_tile_bytes // (width * itemsize), sub)
    tm = (tm // sub) * sub

    # On v7x (2 TensorCores) keep at least 2 grid steps (4 for big slabs) so
    # the "parallel" grid axis actually gives both cores work.
    if n_cores > 1 and slab_bytes > (2 << 20):
        min_steps = 4 if slab_bytes > (8 << 20) else 2
        cap = pl.cdiv(rows, min_steps)
        cap = max(((cap + sub - 1) // sub) * sub, sub)
        tm = min(tm, cap)

    if tm >= rows:
        tm = rows                        # full-extent block is always legal
    grid = (pl.cdiv(rows, tm),)          # partial last block handled by Pallas

    # Explicit VMEM budget from the real footprint: (in + out) x 2 pipeline
    # buffers, plus slack for Mosaic internal scratch.  Independent of the
    # per-generation default scoped limits (16 MiB v5e / 32 MiB v6e, v7x) and
    # well under physical VMEM everywhere (64 MiB/TC v7x, 128 MiB v5e/v6e).
    tile_bytes = tm * width * itemsize
    vmem_limit = min(max(4 * tile_bytes + (8 << 20), 16 << 20), 48 << 20)

    n = rows * width
    cost = pl.CostEstimate(flops=4 * n, transcendentals=n,
                           bytes_accessed=2 * n * itemsize)

    return pl.pallas_call(
        swish_kernel,
        out_shape=jax.ShapeDtypeStruct((rows, width), dtype),
        grid_spec=pl.GridSpec(
            grid=grid,
            in_specs=[pl.BlockSpec((tm, width), lambda i: (i, 0))],
            out_specs=pl.BlockSpec((tm, width), lambda i: (i, 0)),
        ),
        compiler_params=pltpu.CompilerParams(
            dimension_semantics=("parallel",),
            vmem_limit_bytes=vmem_limit),
        cost_estimate=cost,
    )(x2d)


def _pick_width(n, *, max_width=8192):
    # widest lane-dense last dim (multiple of 128) that divides n, capped
    for cand in (8192, 4096, 2048, 1024, 512, 256, 128):
        if cand <= max_width and n % cand == 0:
            return cand
    return _LANE


def swish(x):
    """Elementwise swish for any shape/dtype; no padded/concatenated copies."""
    orig_shape = x.shape
    n = x.size
    if n == 0:
        return x
    if n % _LANE != 0:
        # Rare ragged size: kernel-main + JAX-tail + concatenate would re-read
        # and re-write the whole output (2x HBM traffic for a bandwidth-bound
        # op); fused XLA elementwise is already at the traffic floor.
        # TODO(synk): handle the <128-element ragged tail in-kernel with a
        # masked store if ragged sizes ever become hot.
        return (x * jax.nn.sigmoid(x)).astype(x.dtype)

    width = _pick_width(n)
    x2d = x.reshape(n // width, width)
    return _swish_2d(x2d).reshape(orig_shape)


if __name__ == "__main__":
    key = jax.random.PRNGKey(0)
    x = jax.random.normal(key, (2, 4, 16, 16), dtype=jnp.float32)  # NCHW

    y = jax.block_until_ready(swish(x))

    # Reference check in plain JAX.
    y_ref = x * jax.nn.sigmoid(x)
    assert y.shape == x.shape and y.dtype == x.dtype
    assert jnp.max(jnp.abs(y - y_ref)) < 1e-4

    print("KERNEL_OK")
</pallas_src>

<mosaic_0001>
module attributes {stable_mosaic.version = 11 : i64} {
  func.func @swish_kernel(%arg0: i32, %arg1: memref<1x2048xf32, #tpu.memory_space<vmem>>, %arg2: memref<1x2048xf32, #tpu.memory_space<vmem>>) attributes {dimension_semantics = [#tpu.dimension_semantics<parallel>], iteration_bounds = array<i64: 1>, scalar_prefetch = 0 : i64, scratch_operands = 0 : i64, tpu.core_type = #tpu.core_type<tc>, window_params = [{transform_indices = @transform_0, window_bounds = array<i64: 1, 2048>}, {transform_indices = @transform_1, window_bounds = array<i64: 1, 2048>}]} {
    %c0 = arith.constant 0 : index
    %c0_0 = arith.constant 0 : index
    %0 = vector.load %arg1[%c0, %c0_0] : memref<1x2048xf32, #tpu.memory_space<vmem>>, vector<1x2048xf32>
    %cst = arith.constant 5.000000e-01 : f32
    %1 = vector.broadcast %cst : f32 to vector<1x2048xf32>
    %2 = arith.mulf %1, %0 : vector<1x2048xf32>
    %3 = math.tanh %2 : vector<1x2048xf32>
    %cst_1 = arith.constant 1.000000e+00 : f32
    %4 = vector.broadcast %cst_1 : f32 to vector<1x2048xf32>
    %5 = arith.addf %3, %4 : vector<1x2048xf32>
    %cst_2 = arith.constant 5.000000e-01 : f32
    %6 = vector.broadcast %cst_2 : f32 to vector<1x2048xf32>
    %7 = arith.mulf %6, %5 : vector<1x2048xf32>
    %8 = arith.mulf %0, %7 : vector<1x2048xf32>
    %c0_3 = arith.constant 0 : index
    %c0_4 = arith.constant 0 : index
    %9 = vector.load %arg2[%c0_3, %c0_4] : memref<1x2048xf32, #tpu.memory_space<vmem>>, vector<1x2048xf32>
    tpu.vector_store %arg2[%c0_3, %c0_4], %8 {strides = array<i32>} : memref<1x2048xf32, #tpu.memory_space<vmem>>, vector<1x2048xf32>,
    return
  }
  func.func @transform_0(%arg0: i32) -> (i32, i32) {
    %c0_i32 = arith.constant 0 : i32
    %c0_i32_0 = arith.constant 0 : i32
    return %arg0, %c0_i32 : i32, i32
  }
  func.func @transform_1(%arg0: i32) -> (i32, i32) {
    %c0_i32 = arith.constant 0 : i32
    %c0_i32_0 = arith.constant 0 : i32
    return %arg0, %c0_i32 : i32, i32
  }
}

</mosaic_0001>

<bundles_post_ra>
// kernel: tpu_custom_call.1
= control target key start
LH: loop header
LB: loop body
LE: loop exit
PB: predicated region body
PF: predicated region fallthrough
CT: control target
= control target key end

     0   :  { %6 = vsyncpa [#allocation3], 0  ;;  %s140_s0 = inlined_call_operand.hbm [shape: f32[1,2048], index: 0, kind: input, shape index: {}]   ;;  %s141_s1 = inlined_call_operand.hbm [shape: f32[1,2048], index: 1, kind: output, shape index: {}]  }
   0x1   :  { %7 = vsyncpa [#allocation4], 0  ;;  %s104_s6 = smov [#allocation2]   ;;  %s56_s10 = scalar_lea.hbm %s140_s0, 256 }
   0x2   :  { %s14_s7 = sshll.u32 %s104_s6, 4  ;;  %p57_p0 = scmp.ne.s32.totalorder %s140_s0, %s56_s10  ;;  %s15_s7 = int_to_ptr.vmem [resolvable:$true] %s14_s7 }
   0x3   :  { %p60_p1 = scmp.lt.u32.totalorder %s56_s10, %s140_s0 }
   0x5   :  { %p62_p2 = pnand %p60_p1, %p57_p0 }
   0x7   :  { %65 = shalt.err (!%p62_p2)
}
   0x8   :  { %s66_s15 = scalar_lea.vmem %s15_s7, 256  ;;  %p71_p4 = scmp.lt.s32.totalorder %s15_s7, %s15_s7 }
   0x9   :  { %p67_p3 = scmp.ne.s32.totalorder %s15_s7, %s66_s15  ;;  %p72_p5 = scmp.lt.s32.totalorder %s66_s15, %s66_s15 }
   0xb   :  { %p73_p6 = por %p72_p5, %p71_p4 }
   0xd   :  { %p74_p7 = pnand %p73_p6, %p67_p3 }
   0xf   :  { %77 = shalt.err (!%p74_p7)
}
  0x10   :  { %17 = dma.hbm_to_vmem [thread:$0]  %s140_s0, 256, %s15_s7, [#allocation3]  }
  0x11   :  { %100 = dma.done.wait [#allocation3], 256  }
  0x12   :  { %101 = vsyncadd [#allocation3], 4294967040  ;;  %v21_v0 = vld [vmem:[#allocation2] sm:$0xff]  ;;  %v22_v1 = vld [vmem:[#allocation2 + $0x8] sm:$0xff]  ;;  %s105_s18 = smov [#allocation5]  }
  0x13   :  { %v23_v2 = vmul.f32 0.5, %v21_v0  ;;  %v24_v3 = vmul.f32 0.5, %v22_v1  ;;  %s41_s19 = sshll.u32 %s105_s18, 4  ;;  %s42_s19 = int_to_ptr.vmem [resolvable:$true] %s41_s19 }
  0x14   :  { %s78_s0 = scalar_lea.vmem %s42_s19, 256  ;;  %p83_p9 = scmp.lt.s32.totalorder %s42_s19, %s42_s19 }
  0x15   :  { %52 = vtanh.f32 %v23_v2  ;;  %p79_p8 = scmp.ne.s32.totalorder %s42_s19, %s78_s0  ;;  %p84_p10 = scmp.lt.s32.totalorder %s78_s0, %s78_s0 }
  0x16   :  { %54 = vtanh.f32 %v24_v3 }
  0x17   :  { %p85_p11 = por %p84_p10, %p83_p9 }
  0x19   :  { %p86_p12 = pnand %p85_p11, %p79_p8 }
  0x1f   :  { %v53_v4 = vpop.eup %52 }
  0x20   :  { %v55_v5 = vpop.eup %54  ;;  %v27_v6 = vadd.f32 1.0, %v53_v4 }
  0x21   :  { %v28_v7 = vadd.f32 1.0, %v55_v5 }
  0x22   :  { %v29_v8 = vmul.f32 0.5, %v27_v6 }
  0x23   :  { %v30_v9 = vmul.f32 0.5, %v28_v7 }
  0x24   :  { %v31_v10 = vmul.f32 %v29_v8, %v21_v0 }
  0x25   :  { %v32_v11 = vmul.f32 %v30_v9, %v22_v1 }
  0x26   :  { %33 = vst [vmem:[#allocation5] sm:$0xff] %v31_v10 }
  0x27   :  { %34 = vst [vmem:[#allocation5 + $0x8] sm:$0xff] %v32_v11 }
  0x28   :  { %89 = shalt.err (!%p86_p12)
}
  0x29   :  { %s90_s22 = scalar_lea.hbm %s141_s1, 256 }
  0x2a   :  { %p91_p13 = scmp.ne.s32.totalorder %s141_s1, %s90_s22  ;;  %p94_p0 = scmp.lt.u32.totalorder %s90_s22, %s141_s1 }
  0x2c   :  { %p96_p1 = pnand %p94_p0, %p91_p13 }
  0x2e   :  { %99 = shalt.err (!%p96_p1)
}
  0x2f   :  { %44 = dma.vmem_to_hbm [thread:$0]  %s42_s19, 256, %s141_s1, [#allocation4]  }
  0x30   :  { %102 = dma.done.wait [#allocation4], 256  }
  0x31   :  { %103 = vsyncadd [#allocation4], 4294967040 }
  0x32   :  { %48 = vsyncpa [#allocation3], 1 }
  0x33   :  { %49 = vsyncpa [#allocation4], 1 }

</bundles_post_ra>
